<compile_context>
chip_gen: v7x
topology: tpu7x:2x2x1
jax: 0.10.0
libtpu: 0.0.40
codegen_flags: <defaults>
</compile_context>

<pallas_src>
import functools

import jax
import jax.numpy as jnp
from jax.experimental import pallas as pl
from jax.experimental.pallas import tpu as pltpu


def _round_up(x: int, m: int) -> int:
    return (x + m - 1) // m * m


def _cdiv(a: int, b: int) -> int:
    return -(-a // b)


def _dice_partial_kernel(x_ref, t_ref, out_ref, *, valid_extent: int,
                         block_minor: int, gate_tail: bool,
                         apply_softmax: bool):
    """Per-tile channelwise partial sums for the dice loss.

    x_ref / t_ref: (1, C, S, 128) [fast 4D path] or (1, C, TL) [fallback]
                   logits / target tile.
    out_ref:       (1, 1, C, 128) packed partials; lane 0 = sum(probs * t),
                   lane 1 = sum(probs + t), remaining lanes zero.
    """
    l = pl.program_id(1)

    x = x_ref[0].astype(jnp.float32)   # (C, S, 128) or (C, TL)
    t = t_ref[0].astype(jnp.float32)
    C = x.shape[0]

    if apply_softmax:
        # Channel softmax.  In the 4D layout this is a C-wide elementwise
        # max/add over dense (S, 128) slabs (pure VPU, no XLU).
        m = jnp.max(x, axis=0, keepdims=True)
        e = jnp.exp(x - m)
        probs = e * pl.reciprocal(jnp.sum(e, axis=0, keepdims=True),
                                  approx=False)
    else:
        probs = x

    lane = jax.lax.broadcasted_iota(jnp.int32, (C, 128), 1)

    def _reduce_to_c1(a):
        # Reduce all axes except channel (axis 0) -> (C, 1).
        while a.ndim > 2:
            a = jnp.sum(a, axis=1)
        return jnp.sum(a, axis=1, keepdims=True)

    def pack_and_store(p, tt):
        inter_c = _reduce_to_c1(p * tt)                      # (C, 1)
        denom_c = _reduce_to_c1(p + tt)                      # (C, 1)
        blk = (jnp.where(lane == 0, inter_c, 0.0)
               + jnp.where(lane == 1, denom_c, 0.0))         # (C, 128)
        out_ref[...] = blk.reshape(1, 1, C, 128)

    # Interior tiles: unmasked sums, no per-element masking cost.
    pack_and_store(probs, t)

    if gate_tail:
        # Only the boundary tile re-does the sums with out-of-bounds
        # positions masked (padded reads are unspecified / possibly NaN,
        # but jnp.where selects the 0.0 branch regardless).
        @pl.when(l == pl.num_programs(1) - 1)
        def _():
            pos = (jax.lax.broadcasted_iota(jnp.int32, x.shape, 1)
                   + l * block_minor)
            valid = pos < valid_extent
            pack_and_store(jnp.where(valid, probs, 0.0),
                           jnp.where(valid, t, 0.0))


def dice_loss_pallas(output: jax.Array, target: jax.Array,
                     weight=1.0, eps: float = 1e-4, smooth: float = 0.0,
                     apply_softmax: bool = True,
                     target_block_bytes: int = 4 * 1024 * 1024) -> jax.Array:
    """output, target: (N, C, *spatial). Returns scalar f32 dice loss matching
    the PyTorch DiceLoss module: mean(weight * (1 - (2*I + smooth) /
    (D + smooth + eps))) with I/D channelwise sums of probs*t / probs+t."""
    shape = output.shape
    assert target.shape == shape, (target.shape, shape)
    N, C = int(shape[0]), int(shape[1])
    L = 1
    for d in shape[2:]:
        L *= int(d)
    L = max(L, 1)

    if L % 128 == 0:
        # ---- Fast 4D lane-dense path: (N, C, L/128, 128) -----------------
        L128 = L // 128
        x = output.reshape(N, C, L128, 128)
        t = target.reshape(N, C, L128, 128)

        if L128 <= 8:
            S = L128                                   # full extent allowed
        else:
            # VMEM budget (no sublane padding in this layout).
            s_cap = max(8, (target_block_bytes // (4 * C * 128)) // 8 * 8)
            # Megacore (v7x): keep >=2 (up to 4) grid steps when N == 1.
            min_steps = min(4, max(1, L128 // 8)) if N == 1 else 1
            mc_cap = s_cap
            if min_steps > 1:
                mc_cap = max(8, (L128 // min_steps) // 8 * 8)
            S = min(s_cap, mc_cap)
            if S >= L128:
                S = L128
        tiles = _cdiv(L128, S)
        gate_tail = (tiles * S) != L128
        block = (1, C, S, 128)
        in_map = lambda n, l: (n, 0, l, 0)
        valid_extent, block_minor = L128, S
    else:
        # ---- Fallback 3D path for ragged spatial extents ------------------
        x = output.reshape(N, C, L)
        t = target.reshape(N, C, L)
        c_pad = _round_up(C, 8)                        # real sublane padding
        cap = max(128, (target_block_bytes // (4 * c_pad)) // 128 * 128)
        min_steps = min(4, max(1, L // 128)) if N == 1 else 1
        mc_cap = cap
        if min_steps > 1:
            mc_cap = max(128, (L // min_steps) // 128 * 128)
        TL = min(_round_up(L, 128), cap, mc_cap)
        tiles = _cdiv(L, TL)
        gate_tail = (tiles * TL) != L
        block = (1, C, TL)
        in_map = lambda n, l: (n, 0, l)
        valid_extent, block_minor = L, TL

    kernel = functools.partial(
        _dice_partial_kernel, valid_extent=valid_extent,
        block_minor=block_minor, gate_tail=gate_tail,
        apply_softmax=apply_softmax)

    partials = pl.pallas_call(
        kernel,
        out_shape=jax.ShapeDtypeStruct((N, tiles, C, 128), jnp.float32),
        grid_spec=pltpu.PrefetchScalarGridSpec(
            num_scalar_prefetch=0,
            grid=(N, tiles),
            in_specs=[
                pl.BlockSpec(block, in_map),
                pl.BlockSpec(block, in_map),
            ],
            out_specs=pl.BlockSpec((1, 1, C, 128), lambda n, l: (n, l, 0, 0)),
        ),
        compiler_params=pltpu.CompilerParams(
            dimension_semantics=("parallel", "parallel"),
            vmem_limit_bytes=32 * 1024 * 1024),
    )(x, t)

    # Tiny final reduction + dice in JAX (pairwise-summed; also what lets the
    # grid be fully parallel across v7x's two TensorCores).
    inter = jnp.sum(partials[:, :, :, 0], axis=(0, 1))   # (C,)
    denom = jnp.sum(partials[:, :, :, 1], axis=(0, 1))   # (C,)
    numerator = 2.0 * inter + smooth
    denominator = denom + smooth + eps
    loss_per_channel = 1.0 - numerator / denominator
    w = jnp.asarray(weight, jnp.float32)
    return jnp.mean(w * loss_per_channel)


class DiceLossPallas:
    """Mirror of the PyTorch DiceLoss module."""

    def __init__(self, apply_softmax: bool = True, weight=None,
                 smooth: float = 0.0):
        self.apply_softmax = apply_softmax
        self.weight = 1.0 if weight is None else weight
        self.smooth = smooth

    def __call__(self, output, target):
        return dice_loss_pallas(output, target, weight=self.weight,
                                eps=1e-4, smooth=self.smooth,
                                apply_softmax=self.apply_softmax)


def _reference(output, target, weight=1.0, eps=1e-4, smooth=0.0,
               apply_softmax=True):
    x = output.astype(jnp.float32)
    probs = jax.nn.softmax(x, axis=1) if apply_softmax else x
    t = target.astype(jnp.float32)
    rdims = (0,) + tuple(range(2, x.ndim))
    inter = jnp.sum(probs * t, axis=rdims)
    denom = jnp.sum(probs + t, axis=rdims)
    loss_c = 1.0 - (2.0 * inter + smooth) / (denom + smooth + eps)
    return jnp.mean(jnp.asarray(weight, jnp.float32) * loss_c)


if __name__ == "__main__":
    key = jax.random.PRNGKey(0)
    k1, k2, k3, k4, k5, k6 = jax.random.split(key, 6)

    # Case 1: canonical small segmentation shapes (L % 128 == 0 -> 4D path).
    N, C, H, W = 2, 4, 16, 16
    logits = jax.random.normal(k1, (N, C, H, W), dtype=jnp.float32)
    labels = jax.random.randint(k2, (N, H, W), 0, C)
    target = jnp.transpose(jax.nn.one_hot(labels, C, dtype=jnp.float32),
                           (0, 3, 1, 2))  # (N, C, H, W)
    loss_fn = DiceLossPallas(apply_softmax=True, weight=None, smooth=0.0)
    loss = jax.block_until_ready(loss_fn(logits, target))
    ref = jax.block_until_ready(_reference(logits, target))
    assert jnp.allclose(loss, ref, rtol=1e-3, atol=1e-3), (loss, ref)

    # Case 2: ragged spatial size (3D fallback, lane masking on last tile),
    # odd channel count, per-channel weight and non-zero smooth.
    N2, C2, H2, W2 = 2, 3, 7, 9
    logits2 = jax.random.normal(k3, (N2, C2, H2, W2), dtype=jnp.float32)
    labels2 = jax.random.randint(k4, (N2, H2, W2), 0, C2)
    target2 = jnp.transpose(jax.nn.one_hot(labels2, C2, dtype=jnp.float32),
                            (0, 3, 1, 2))
    w2 = jnp.array([0.5, 1.0, 2.0], dtype=jnp.float32)
    loss2 = jax.block_until_ready(
        dice_loss_pallas(logits2, target2, weight=w2, smooth=1.0))
    ref2 = jax.block_until_ready(
        _reference(logits2, target2, weight=w2, smooth=1.0))
    assert jnp.allclose(loss2, ref2, rtol=1e-3, atol=1e-3), (loss2, ref2)

    # Case 3: N == 1 with L % 128 == 0 and L/128 not a multiple of the tile
    # (exercises the megacore tile cap + sublane tail masking in the 4D path).
    N3, C3, H3, W3 = 1, 4, 36, 64
    logits3 = jax.random.normal(k5, (N3, C3, H3, W3), dtype=jnp.float32)
    labels3 = jax.random.randint(k6, (N3, H3, W3), 0, C3)
    target3 = jnp.transpose(jax.nn.one_hot(labels3, C3, dtype=jnp.float32),
                            (0, 3, 1, 2))
    loss3 = jax.block_until_ready(dice_loss_pallas(logits3, target3))
    ref3 = jax.block_until_ready(_reference(logits3, target3))
    assert jnp.allclose(loss3, ref3, rtol=1e-3, atol=1e-3), (loss3, ref3)

    # Case 4: apply_softmax=False path (probs passed in directly).
    probs2 = jax.nn.softmax(logits2, axis=1)
    loss4 = jax.block_until_ready(
        dice_loss_pallas(probs2, target2, weight=w2, smooth=1.0,
                         apply_softmax=False))
    ref4 = jax.block_until_ready(
        _reference(probs2, target2, weight=w2, smooth=1.0,
                   apply_softmax=False))
    assert jnp.allclose(loss4, ref4, rtol=1e-3, atol=1e-3), (loss4, ref4)

    print("KERNEL_OK")
</pallas_src>

<mosaic_0001>
module attributes {stable_mosaic.version = 11 : i64} {
  func.func @_dice_partial_kernel(%arg0: i32, %arg1: i32, %arg2: memref<1x4x2x128xf32, #tpu.memory_space<vmem>>, %arg3: memref<1x4x2x128xf32, #tpu.memory_space<vmem>>, %arg4: memref<1x1x4x128xf32, #tpu.memory_space<vmem>>) attributes {dimension_semantics = [#tpu.dimension_semantics<parallel>, #tpu.dimension_semantics<parallel>], iteration_bounds = array<i64: 2, 1>, scalar_prefetch = 0 : i64, scratch_operands = 0 : i64, tpu.core_type = #tpu.core_type<tc>, window_params = [{transform_indices = @transform_0, window_bounds = array<i64: 1, 4, 2, 128>}, {transform_indices = @transform_1, window_bounds = array<i64: 1, 4, 2, 128>}, {transform_indices = @transform_2, window_bounds = array<i64: 1, 1, 4, 128>}]} {
    %c0 = arith.constant 0 : index
    %c0_0 = arith.constant 0 : index
    %c0_1 = arith.constant 0 : index
    %c0_2 = arith.constant 0 : index
    %0 = vector.load %arg2[%c0, %c0_0, %c0_1, %c0_2] : memref<1x4x2x128xf32, #tpu.memory_space<vmem>>, vector<1x4x2x128xf32>
    %1 = vector.shape_cast %0 : vector<1x4x2x128xf32> to vector<4x2x128xf32>
    %c0_3 = arith.constant 0 : index
    %c0_4 = arith.constant 0 : index
    %c0_5 = arith.constant 0 : index
    %c0_6 = arith.constant 0 : index
    %2 = vector.load %arg3[%c0_3, %c0_4, %c0_5, %c0_6] : memref<1x4x2x128xf32, #tpu.memory_space<vmem>>, vector<1x4x2x128xf32>
    %3 = vector.shape_cast %2 : vector<1x4x2x128xf32> to vector<4x2x128xf32>
    %cst = arith.constant dense<0xFF800000> : vector<2x128xf32>
    %4 = vector.multi_reduction <maximumf>, %1, %cst [0] : vector<4x2x128xf32> to vector<2x128xf32>
    %5 = vector.shape_cast %4 : vector<2x128xf32> to vector<1x2x128xf32>
    %6 = vector.broadcast %5 : vector<1x2x128xf32> to vector<4x2x128xf32>
    %7 = arith.subf %1, %6 : vector<4x2x128xf32>
    %8 = math.exp %7 : vector<4x2x128xf32>
    %cst_7 = arith.constant dense<0.000000e+00> : vector<2x128xf32>
    %9 = vector.multi_reduction <add>, %8, %cst_7 [0] : vector<4x2x128xf32> to vector<2x128xf32>
    %10 = vector.shape_cast %9 : vector<2x128xf32> to vector<1x2x128xf32>
    %11 = tpu.reciprocal %10 : vector<1x2x128xf32> -> vector<1x2x128xf32>
    %12 = vector.broadcast %11 : vector<1x2x128xf32> to vector<4x2x128xf32>
    %13 = arith.mulf %8, %12 : vector<4x2x128xf32>
    %14 = tpu.iota {dimensions = array<i32: 1>} : vector<4x128xi32>
    %15 = arith.mulf %13, %3 : vector<4x2x128xf32>
    %cst_8 = arith.constant dense<0.000000e+00> : vector<4x128xf32>
    %16 = vector.multi_reduction <add>, %15, %cst_8 [1] : vector<4x2x128xf32> to vector<4x128xf32>
    %cst_9 = arith.constant dense<0.000000e+00> : vector<4xf32>
    %17 = vector.multi_reduction <add>, %16, %cst_9 [1] : vector<4x128xf32> to vector<4xf32>
    %18 = vector.shape_cast %17 : vector<4xf32> to vector<4x1xf32>
    %19 = arith.addf %13, %3 : vector<4x2x128xf32>
    %cst_10 = arith.constant dense<0.000000e+00> : vector<4x128xf32>
    %20 = vector.multi_reduction <add>, %19, %cst_10 [1] : vector<4x2x128xf32> to vector<4x128xf32>
    %cst_11 = arith.constant dense<0.000000e+00> : vector<4xf32>
    %21 = vector.multi_reduction <add>, %20, %cst_11 [1] : vector<4x128xf32> to vector<4xf32>
    %22 = vector.shape_cast %21 : vector<4xf32> to vector<4x1xf32>
    %c0_i32 = arith.constant 0 : i32
    %23 = vector.broadcast %c0_i32 : i32 to vector<4x128xi32>
    %24 = arith.cmpi eq, %14, %23 : vector<4x128xi32>
    %cst_12 = arith.constant 0.000000e+00 : f32
    %25 = vector.shape_cast %18 : vector<4x1xf32> to vector<4x1xf32>
    %26 = vector.broadcast %25 : vector<4x1xf32> to vector<4x128xf32>
    %27 = vector.broadcast %cst_12 : f32 to vector<4x128xf32>
    %28 = arith.select %24, %26, %27 : vector<4x128xi1>, vector<4x128xf32>
    %c1_i32 = arith.constant 1 : i32
    %29 = vector.broadcast %c1_i32 : i32 to vector<4x128xi32>
    %30 = arith.cmpi eq, %14, %29 : vector<4x128xi32>
    %cst_13 = arith.constant 0.000000e+00 : f32
    %31 = vector.shape_cast %22 : vector<4x1xf32> to vector<4x1xf32>
    %32 = vector.broadcast %31 : vector<4x1xf32> to vector<4x128xf32>
    %33 = vector.broadcast %cst_13 : f32 to vector<4x128xf32>
    %34 = arith.select %30, %32, %33 : vector<4x128xi1>, vector<4x128xf32>
    %35 = arith.addf %28, %34 : vector<4x128xf32>
    %36 = vector.shape_cast %35 : vector<4x128xf32> to vector<1x1x4x128xf32>
    %c0_14 = arith.constant 0 : index
    %c0_15 = arith.constant 0 : index
    %c0_16 = arith.constant 0 : index
    %c0_17 = arith.constant 0 : index
    %37 = vector.load %arg4[%c0_14, %c0_15, %c0_16, %c0_17] : memref<1x1x4x128xf32, #tpu.memory_space<vmem>>, vector<1x1x4x128xf32>
    tpu.vector_store %arg4[%c0_14, %c0_15, %c0_16, %c0_17], %36 {strides = array<i32>} : memref<1x1x4x128xf32, #tpu.memory_space<vmem>>, vector<1x1x4x128xf32>,
    return
  }
  func.func @transform_0(%arg0: i32, %arg1: i32) -> (i32, i32, i32, i32) {
    %c0_i32 = arith.constant 0 : i32
    %c0_i32_0 = arith.constant 0 : i32
    %c0_i32_1 = arith.constant 0 : i32
    return %arg0, %c0_i32, %arg1, %c0_i32_0 : i32, i32, i32, i32
  }
  func.func @transform_1(%arg0: i32, %arg1: i32) -> (i32, i32, i32, i32) {
    %c0_i32 = arith.constant 0 : i32
    %c0_i32_0 = arith.constant 0 : i32
    %c0_i32_1 = arith.constant 0 : i32
    return %arg0, %c0_i32, %arg1, %c0_i32_0 : i32, i32, i32, i32
  }
  func.func @transform_2(%arg0: i32, %arg1: i32) -> (i32, i32, i32, i32) {
    %c0_i32 = arith.constant 0 : i32
    %c0_i32_0 = arith.constant 0 : i32
    %c0_i32_1 = arith.constant 0 : i32
    return %arg0, %arg1, %c0_i32, %c0_i32_0 : i32, i32, i32, i32
  }
}

</mosaic_0001>

<bundles_post_ra>
// kernel: tpu_custom_call.1
= control target key start
LH: loop header
LB: loop body
LE: loop exit
PB: predicated region body
PF: predicated region fallthrough
CT: control target
= control target key end

     0   :  { %7 = vsyncpa [#allocation3], 0  ;;  %s1011_s0 = inlined_call_operand.hbm [shape: f32[2,4,2,128], index: 0, kind: input, shape index: {}]   ;;  %s1012_s1 = inlined_call_operand.hbm [shape: f32[2,4,2,128], index: 1, kind: input, shape index: {}]   ;;  %s1013_s2 = inlined_call_operand.hbm [shape: f32[2,1,4,128], index: 2, kind: output, shape index: {}]  }
   0x1   :  { %9 = vsyncpa [#allocation3 + $0x1], 0 }
   0x2   :  { %10 = vsyncpa [#allocation6], 0 }
   0x3   :  { %12 = vsyncpa [#allocation6 + $0x1], 0 }
   0x4   :  { %13 = vsyncpa [#allocation4], 0 }
   0x5   :  { %15 = vsyncpa [#allocation4 + $0x1], 0  ;;  %s748_s9 = smov 0   ;;  %s750_s10 = smov 0  }
   0x6   :  { %s752_s11 = smov 0   ;;  %s754_s12 = smov 0  }
   0x7   :  { %s756_s13 = smov 0   ;;  %s758_s14 = smov 0  }
   0x8 LB: > { %s481_s15 = sadd.s32 4294967295, %s726_s14   ;;  %s482_s16 = sadd.s32 4294967294, %s726_s14   ;;  %s726_s14 = sphi %s758_s14, %s21_s14   ;;  %s722_s13 = sphi %s756_s13, %s1031_s13   ;;  %s718_s12 = sphi %s754_s12, %s1030_s12   ;;  %s714_s11 = sphi %s752_s11, %s1029_s11   ;;  %s710_s10 = sphi %s750_s10, %s1028_s10   ;;  %s706_s9 = sphi %s748_s9, %s1027_s9  }
   0x9   : > { %s33_s17 = sadd.s32 1, %s722_s13  ;;  %s42_s18 = sadd.s32 1, %s714_s11 }
   0xa   : > { %p35_p0 = scmp.ge.s32.totalorder %s33_s17, 2  ;;  %p49_p1 = scmp.ne.s32.totalorder %s714_s11, %s710_s10 }
   0xb   : > { %p50_p2 = scmp.eq.s32.totalorder %s726_s14, 0  ;;  %p55_p3 = scmp.ne.s32.totalorder %s710_s10, %s706_s9 }
   0xc   : > { %s1033_s17 = smov (%p35_p0, %s33_s17), 0  ;;  %p56_p5 = scmp.eq.s32.totalorder %s481_s15, 0 }
   0xd   : > { %p789_p4 = por %p50_p2, %p49_p1  ;;  %s37_s20 = ssub.s32 %s722_s13, %s1033_s17 }
   0xe   : > { %p109_p6 = scmp.eq.s32.totalorder %s481_s15, 1  ;;  %p40_p7 = scmp.eq.s32.totalorder %s37_s20, 0 }
   0xf   : > { %p795_p8 = por %p56_p5, %p55_p3  ;;  %p115_p10 = scmp.eq.s32.totalorder %s482_s16, 1 }
  0x10   : > { %p799_p9 = por %p109_p6, %p49_p1  ;;  %p518_p13 = scmp.lt.s32.totalorder %s726_s14, 2 }
  0x11   : > { %s1017_s21 = scalar_select %p795_p8, 1, 0 }
  0x12   : > { %s1018_s22 = scalar_select %p799_p9, 1, 0 }
  0x13   : > { %s804_s23 = scalar_select %p40_p7, %s714_s11, %s42_s18  }
  0x14   : > { %p806_p11 = por %p115_p10, %p55_p3  ;;  %s813_s25 = sand.u32 1, %s714_s11  }
  0x15   : > { %s485_s26 = sshll.u32 %s813_s25, 3  ;;  %s499_s27 = sshll.u32 %s722_s13, 7 }
  0x16   : > { %s1019_s24 = scalar_select %p806_p11, 1, 0 }
  0x17   : > { %s822_s30 = scalar_lea.hbm %s1011_s0, %s499_s27  ;;  %s139_s3 = scalar_lea.vmem [#allocation2], %s485_s26 }
  0x18   : > { %s147_s4 = sshll.u32 %s139_s3, 4  ;;  %p830_p0 = pnand %p518_p13, %p789_p4  ;;  %s826_s4 = int_to_ptr.vmem [resolvable:$true] %s147_s4 }
  0x19   : > { %s136_s6 = scalar_lea.sflag [#allocation3], %s813_s25  ;;  %s580_s7 = scalar_lea.hbm %s822_s30, 128 }
  0x1a   : > { %p581_p2 = scmp.ne.s32.totalorder %s822_s30, %s580_s7  ;;  %p582_p3 = pneg %p830_p0 }
  0x1b   : > { %s585_s16 = scalar_lea.hbm %s1011_s0, 256  ;;  %p586_p4 = scmp.lt.u32.totalorder %s822_s30, %s1011_s0 }
  0x1c   : > { %p583_p5 = pnand %p582_p3, %p581_p2  ;;  %p587_p7 = scmp.lt.u32.totalorder %s585_s16, %s580_s7 }
  0x1d   : > { %p589_p13 = scmp.lt.u32.totalorder %s580_s7, %s822_s30 }
  0x1e   : > { %p584_p6 = pneg %p583_p5  ;;  %p588_p10 = por %p587_p7, %p586_p4 }
  0x20   : > { %p590_p12 = por %p589_p13, %p588_p10 }
  0x22   : > { %p591_p1 = pnand %p590_p12, %p584_p6 }
  0x24   : > { %594 = shalt.err (!%p591_p1)
}
  0x25   : > { %s595_s20 = scalar_lea.vmem %s826_s4, 128  ;;  %s728_s28 = smov [#allocation2]  }
  0x26   : > { %p596_p2 = scmp.ne.s32.totalorder %s826_s4, %s595_s20  ;;  %s600_s29 = sshll.u32 %s728_s28, 4  ;;  %s601_s29 = int_to_ptr.vmem [resolvable:$false] %s600_s29 }
  0x27   : > { %s602_s3 = scalar_lea.vmem %s601_s29, 256  ;;  %p603_p9 = scmp.lt.s32.totalorder %s826_s4, %s601_s29 }
  0x28   : > { %p598_p5 = pnand %p596_p2, %p582_p3  ;;  %p604_p4 = scmp.lt.s32.totalorder %s602_s3, %s595_s20 }
  0x2a   : > { %p599_p11 = pneg %p598_p5  ;;  %p605_p7 = por %p604_p4, %p603_p9 }
  0x2c   : > { %p606_p10 = pnand %p605_p7, %p599_p11 }
  0x2e   : > { %609 = shalt.err (!%p606_p10)
}
  0x2f   : > { %s729_s7 = smov 32   ;;  %s730_s8 = smov 2  }
  0x30   : > { %510 = dma.hbm_to_vmem [thread:$0]  (!%p830_p0), %s822_s30, 128, %s826_s4, %s136_s6, %s729_s7, %s729_s7, %s730_s8  }
  0x31   : > { %p177_p9 = scmp.lt.s32.totalorder %s726_s14, 3  ;;  %s872_s18 = scalar_lea.hbm %s1012_s1, %s499_s27 }
  0x32   : > { %p1021_p11 = scmp.ge.s32.totalorder %s726_s14, 1  ;;  %s161_s20 = scalar_lea.vmem [#allocation5], %s485_s26 }
  0x33   : > { %s169_s28 = sshll.u32 %s161_s20, 4  ;;  %s158_s30 = scalar_lea.sflag [#allocation6], %s813_s25  ;;  %s882_s28 = int_to_ptr.vmem [resolvable:$true] %s169_s28 }
  0x34   : > { %p876_p12 = pnand %p1021_p11, %p177_p9  ;;  %s610_s4 = scalar_lea.hbm %s872_s18, 128 }
  0x35   : > { %p611_p1 = scmp.ne.s32.totalorder %s872_s18, %s610_s4  ;;  %s615_s29 = scalar_lea.hbm %s1012_s1, 256 }
  0x36   : > { %p616_p2 = scmp.lt.u32.totalorder %s872_s18, %s1012_s1  ;;  %p617_p5 = scmp.lt.u32.totalorder %s615_s29, %s610_s4 }
  0x37   : > { %p613_p6 = pnand %p611_p1, %p582_p3  ;;  %p619_p7 = scmp.lt.u32.totalorder %s610_s4, %s872_s18 }
  0x38   : > { %p618_p4 = por %p617_p5, %p616_p2 }
  0x39   : > { %p614_p13 = pneg %p613_p6 }
  0x3a   : > { %p620_p10 = por %p619_p7, %p618_p4 }
  0x3c   : > { %p621_p9 = pnand %p620_p10, %p614_p13 }
  0x3e   : > { %624 = shalt.err (!%p621_p9)
}
  0x3f   : > { %s625_s26 = scalar_lea.vmem %s882_s28, 128  ;;  %s731_s16 = smov [#allocation5]  }
  0x40   : > { %p626_p11 = scmp.ne.s32.totalorder %s882_s28, %s625_s26  ;;  %s630_s20 = sshll.u32 %s731_s16, 4  ;;  %s631_s20 = int_to_ptr.vmem [resolvable:$false] %s630_s20 }
  0x41   : > { %s632_s27 = scalar_lea.vmem %s631_s20, 256  ;;  %p633_p8 = scmp.lt.s32.totalorder %s882_s28, %s631_s20 }
  0x42   : > { %p628_p1 = pnand %p626_p11, %p582_p3  ;;  %p634_p2 = scmp.lt.s32.totalorder %s632_s27, %s625_s26 }
  0x44   : > { %p629_p6 = pneg %p628_p1  ;;  %p635_p5 = por %p634_p2, %p633_p8 }
  0x46   : > { %p636_p4 = pnand %p635_p5, %p629_p6 }
  0x48   : > { %639 = shalt.err (!%p636_p4)
}
  0x49   : > { %513 = dma.hbm_to_vmem [thread:$0]  (!%p830_p0), %s872_s18, 128, %s882_s28, %s158_s30, %s729_s7, %s729_s7, %s730_s8  }
  0x4a   : > { %181 = sbr.rel (%p876_p12) target bundleno = 309 (0x135), region = 28  ;;  %s916_s4 = sand.u32 (!%p876_p12), 1, %s710_s10  }
  0x4b   : > { %s492_s6 = sshll.u32 (!%p876_p12), %s916_s4, 3  ;;  %s184_s29 = scalar_lea.sflag (!%p876_p12), [#allocation3], %s916_s4 }
  0x4c   : > { %s187_s5 = scalar_lea.vmem (!%p876_p12), [#allocation2], %s492_s6  ;;  %p1023_p8 = scmp.ne.s32.totalorder (!%p876_p12), %s1017_s21, 0 }
  0x51   : > { %693 = dma.done.wait (%p1023_p8), %s184_s29, 128  }
  0x52   : > { %695 = vsyncadd (%p1023_p8), %s184_s29, 4294967168  ;;  %s193_s25 = scalar_lea.sflag [#allocation6], %s916_s4  ;;  %s925_s7 = scalar_lea.vmem [#allocation5], %s492_s6 }
  0x53   : > { %697 = dma.done.wait (%p1023_p8), %s193_s25, 128  }
  0x54   : > { %699 = vsyncadd (%p1023_p8), %s193_s25, 4294967168  ;;  %vm230_vm0 = vcmask 1041408   ;;  %v222_v0 = vld [vmem:[%s187_s5] sm:$0x3]  ;;  %v223_v1 = vld [vmem:[%s187_s5 + $0x2] sm:$0x3] }
  0x55   : > { %v224_v2 = vld [vmem:[%s187_s5 + $0x4] sm:$0x3]  ;;  %v225_v3 = vld [vmem:[%s187_s5 + $0x6] sm:$0x3]  ;;  %v231_v4 = vsel %vm230_vm0, %v222_v0, -inf  ;;  %v232_v5 = vsel %vm230_vm0, %v223_v1, -inf }
  0x56   : > { %v233_v6 = vsel %vm230_vm0, %v224_v2, -inf  ;;  %v234_v7 = vsel %vm230_vm0, %v225_v3, -inf  ;;  %v235_v8 = vmax.f32 %v231_v4, %v232_v5  ;;  %v226_v30 = vld [vmem:[%s925_s7] sm:$0x3]  ;;  %v227_v32 = vld [vmem:[%s925_s7 + $0x2] sm:$0x3] }
  0x57   : > { %v236_v9 = vmax.f32 %v233_v6, %v234_v7  ;;  %v228_v33 = vld [vmem:[%s925_s7 + $0x4] sm:$0x3]  ;;  %v229_v34 = vld [vmem:[%s925_s7 + $0x6] sm:$0x3]  ;;  %vm300_vm1 = vcmask 1041409   ;;  %vm302_vm2 = vcmask 1042434  }
  0x58   : > { %vm304_vm3 = vcmask 1043459   ;;  %vm307_vm4 = vcmask 1043456   ;;  %s494_s21 = sshll.u32 %s916_s4, 2  ;;  %s496_s8 = sshll.u32 %s718_s12, 6 }
  0x59   : > { %v237_v10 = vmax.f32 %v235_v8, %v236_v9  ;;  %s221_s18 = scalar_lea.vmem [#allocation7], %s494_s21  ;;  %s962_s3 = scalar_lea.hbm %s1013_s2, %s496_s8 }
  0x5a   : > { %s375_s19 = sshll.u32 %s221_s18, 4  ;;  %s361_s15 = scalar_lea.sflag [#allocation4], %s916_s4  ;;  %s964_s19 = int_to_ptr.vmem [resolvable:$true] %s375_s19 }
  0x5b   : > { %v238_v11 = vsub.f32 %v222_v0, %v237_v10  ;;  %v239_v12 = vsub.f32 %v223_v1, %v237_v10  ;;  %v240_v13 = vsub.f32 %v224_v2, %v237_v10  ;;  %v241_v14 = vsub.f32 %v225_v3, %v237_v10  ;;  %s640_s26 = scalar_lea.vmem %s964_s19, 64  ;;  %p1024_p3 = scmp.ne.s32.totalorder %s1018_s22, 0 }
  0x5c   : > { %p641_p0 = scmp.ne.s32.totalorder %s964_s19, %s640_s26  ;;  %s732_s12 = smov [#allocation7]  }
  0x5d   : > { %v242_v15 = vmul.f32 1.442695, %v238_v11  ;;  %v244_v16 = vmul.f32 1.442695, %v239_v12  ;;  %v246_v17 = vmul.f32 1.442695, %v240_v13 }
  0x5e   : > { %v248_v18 = vmul.f32 1.442695, %v241_v14  ;;  %p642_p12 = pnand %p641_p0, %p1024_p3  ;;  %s644_s16 = sshll.u32 %s732_s12, 4  ;;  %s645_s16 = int_to_ptr.vmem [resolvable:$false] %s644_s16 }
  0x5f   : > { %570 = vpow2.f32 %v242_v15  ;;  %s646_s20 = scalar_lea.vmem %s645_s16, 128  ;;  %p647_p7 = scmp.lt.s32.totalorder %s964_s19, %s645_s16 }
  0x60   : > { %572 = vpow2.f32 %v244_v16  ;;  %p643_p13 = pneg %p642_p12  ;;  %p648_p10 = scmp.lt.s32.totalorder %s646_s20, %s640_s26 }
  0x61   : > { %574 = vpow2.f32 %v246_v17 }
  0x62   : > { %576 = vpow2.f32 %v248_v18  ;;  %p649_p9 = por %p648_p10, %p647_p7 }
  0x64   : > { %p650_p11 = pnand %p649_p9, %p643_p13 }
  0x69   : > { %v571_v19 = vpop.eup %570 }
  0x6a   : > { %v573_v20 = vpop.eup %572  ;;  %v250_v21 = vsel %vm230_vm0, %v571_v19, 0.0 }
  0x6b   : > { %v575_v22 = vpop.eup %574  ;;  %v251_v23 = vsel %vm230_vm0, %v573_v20, 0.0 }
  0x6c   : > { %v577_v24 = vpop.eup %576  ;;  %v252_v25 = vadd.f32 %v251_v23, %v250_v21  ;;  %v253_v26 = vsel %vm230_vm0, %v575_v22, 0.0 }
  0x6d   : > { %v255_v27 = vsel %vm230_vm0, %v577_v24, 0.0 }
  0x6e   : > { %v254_v28 = vadd.f32 %v253_v26, %v252_v25 }
  0x70   : > { %v256_v29 = vadd.f32 %v255_v27, %v254_v28 }
  0x72   : > { %578 = vrcp.f32 %v256_v29 }
  0x7c   : > { %v579_v31 = vpop.eup %578 }
  0x7d   : > { %v258_v35 = vmul.f32 %v579_v31, %v571_v19  ;;  %v259_v36 = vmul.f32 %v579_v31, %v573_v20  ;;  %v260_v37 = vmul.f32 %v579_v31, %v575_v22  ;;  %v261_v38 = vmul.f32 %v579_v31, %v577_v24 }
  0x7f   : > { %v264_v39 = vmul.f32 %v258_v35, %v226_v30  ;;  %v265_v40 = vmul.f32 %v259_v36, %v227_v32  ;;  %v266_v41 = vmul.f32 %v260_v37, %v228_v33  ;;  %v267_v42 = vmul.f32 %v261_v38, %v229_v34 }
  0x80   : > { %v311_v43 = vadd.f32 %v258_v35, %v226_v30  ;;  %v312_v44 = vadd.f32 %v259_v36, %v227_v32  ;;  %v313_v45 = vadd.f32 %v260_v37, %v228_v33  ;;  %v314_v46 = vadd.f32 %v261_v38, %v229_v34 }
  0x81   : > { %v268_v47 = vsel %vm230_vm0, %v264_v39, 0.0  ;;  %v275_v48 = vsel %vm230_vm0, %v265_v40, 0.0  ;;  %v282_v49 = vsel %vm230_vm0, %v266_v41, 0.0  ;;  %v289_v50 = vsel %vm230_vm0, %v267_v42, 0.0 }
  0x82   : > { %v269_v51 = vrot.slane %v268_v47, 4  ;;  %v276_v52 = vrot.slane %v275_v48, 4  ;;  %v283_v53 = vrot.slane %v282_v49, 4  ;;  %v290_v54 = vrot.slane %v289_v50, 4 }
  0x83   : > { %v315_v55 = vsel %vm230_vm0, %v311_v43, 0.0  ;;  %v322_v56 = vsel %vm230_vm0, %v312_v44, 0.0  ;;  %v329_v57 = vsel %vm230_vm0, %v313_v45, 0.0  ;;  %v336_v58 = vsel %vm230_vm0, %v314_v46, 0.0 }
  0x84   : > { %v270_v59 = vadd.f32 %v269_v51, %v268_v47  ;;  %v277_v60 = vadd.f32 %v276_v52, %v275_v48  ;;  %v284_v61 = vadd.f32 %v283_v53, %v282_v49  ;;  %v291_v62 = vadd.f32 %v290_v54, %v289_v50 }
  0x85   : > { %v316_v63 = vrot.slane %v315_v55, 4  ;;  %v323_v0 = vrot.slane %v322_v56, 4  ;;  %v330_v1 = vrot.slane %v329_v57, 4  ;;  %v337_v2 = vrot.slane %v336_v58, 4 }
  0x86   : > { %v271_v3 = vrot.slane %v270_v59, 2  ;;  %v278_v4 = vrot.slane %v277_v60, 2  ;;  %v285_v5 = vrot.slane %v284_v61, 2  ;;  %v292_v6 = vrot.slane %v291_v62, 2 }
  0x87   : > { %v317_v7 = vadd.f32 %v316_v63, %v315_v55  ;;  %v324_v8 = vadd.f32 %v323_v0, %v322_v56  ;;  %v331_v9 = vadd.f32 %v330_v1, %v329_v57  ;;  %v338_v10 = vadd.f32 %v337_v2, %v336_v58 }
  0x88   : > { %v272_v11 = vadd.f32 %v271_v3, %v270_v59  ;;  %v279_v12 = vadd.f32 %v278_v4, %v277_v60  ;;  %v286_v13 = vadd.f32 %v285_v5, %v284_v61  ;;  %v293_v14 = vadd.f32 %v292_v6, %v291_v62 }
  0x89   : > { %v318_v15 = vrot.slane %v317_v7, 2  ;;  %v325_v16 = vrot.slane %v324_v8, 2  ;;  %v332_v17 = vrot.slane %v331_v9, 2  ;;  %v339_v18 = vrot.slane %v338_v10, 2 }
  0x8a   : > { %v273_v19 = vrot.slane %v272_v11, 1  ;;  %v280_v20 = vrot.slane %v279_v12, 1  ;;  %v287_v21 = vrot.slane %v286_v13, 1  ;;  %v294_v22 = vrot.slane %v293_v14, 1 }
  0x8b   : > { %v319_v23 = vadd.f32 %v318_v15, %v317_v7  ;;  %v326_v24 = vadd.f32 %v325_v16, %v324_v8  ;;  %v333_v25 = vadd.f32 %v332_v17, %v331_v9  ;;  %v340_v26 = vadd.f32 %v339_v18, %v338_v10 }
  0x8c   : > { %v274_v27 = vadd.f32 %v273_v19, %v272_v11  ;;  %v281_v28 = vadd.f32 %v280_v20, %v279_v12  ;;  %v288_v29 = vadd.f32 %v287_v21, %v286_v13  ;;  %v295_v30 = vadd.f32 %v294_v22, %v293_v14 }
  0x8d   : > { %v320_v31 = vrot.slane %v319_v23, 1  ;;  %v327_v32 = vrot.slane %v326_v24, 1  ;;  %v334_v33 = vrot.slane %v333_v25, 1  ;;  %v341_v34 = vrot.slane %v340_v26, 1 }
  0x8e   : > { %v301_v35 = vsel %vm300_vm1, %v281_v28, %v274_v27  ;;  %v262_v47 = vlaneseq }
  0x8f   : > { %v303_v36 = vsel %vm302_vm2, %v288_v29, %v301_v35  ;;  %v321_v37 = vadd.f32 %v320_v31, %v319_v23  ;;  %v328_v38 = vadd.f32 %v327_v32, %v326_v24  ;;  %v335_v39 = vadd.f32 %v334_v33, %v333_v25 }
  0x90   : > { %v305_v40 = vsel %vm304_vm3, %v295_v30, %v303_v36  ;;  %v342_v41 = vadd.f32 %v341_v34, %v340_v26  ;;  %v263_v48 = vand.u32 127, %v262_v47 }
  0x91   : > { %v308_v42 = vsel %vm307_vm4, %v305_v40, 0.0  ;;  %v347_v43 = vsel %vm300_vm1, %v328_v38, %v321_v37 }
  0x92   : > { %309 = vadd.xlane.f32.xlu0 %v308_v42  ;;  %v348_v44 = vsel %vm302_vm2, %v335_v39, %v347_v43  ;;  %vm354_vm5 = vcmp.eq.s32.totalorder %v263_v48, 0  ;;  %vm356_vm6 = vcmp.eq.s32.totalorder %v263_v48, 1 }
  0x93   : > { %v349_v45 = vsel %vm304_vm3, %v342_v41, %v348_v44 }
  0x94   : > { %v351_v46 = vsel %vm307_vm4, %v349_v45, 0.0 }
  0x96   : > { %352 = vadd.xlane.f32.xlu0 %v351_v46 }
 0x11f   : > { %v310_v49 = vpop.xlane.xlu0 %309 }
 0x120   : > { %v355_v51 = vsel %vm354_vm5, %v310_v49, 0.0 }
 0x123   : > { %v353_v50 = vpop.xlane.xlu0 %352 }
 0x124   : > { %v357_v52 = vsel %vm356_vm6, %v353_v50, 0.0 }
 0x125   : > { %v358_v53 = vadd.f32 %v357_v52, %v355_v51 }
 0x127   : > { %359 = vst [vmem:[%s221_s18] sm:$0xf] %v358_v53 }
 0x128   : > { %653 = shalt.err (!%p650_p11)
}
 0x129   : > { %s654_s27 = scalar_lea.hbm %s962_s3, 64  ;;  %s658_s29 = scalar_lea.hbm %s1013_s2, 128 }
 0x12a   : > { %p655_p1 = scmp.ne.s32.totalorder %s962_s3, %s654_s27  ;;  %p659_p5 = scmp.lt.u32.totalorder %s962_s3, %s1013_s2 }
 0x12b   : > { %p660_p4 = scmp.lt.u32.totalorder %s658_s29, %s654_s27  ;;  %p662_p0 = scmp.lt.u32.totalorder %s654_s27, %s962_s3 }
 0x12c   : > { %p656_p6 = pnand %p655_p1, %p1024_p3 }
 0x12d   : > { %p661_p8 = por %p660_p4, %p659_p5 }
 0x12e   : > { %p657_p2 = pneg %p656_p6 }
 0x12f   : > { %p663_p12 = por %p662_p0, %p661_p8 }
 0x131   : > { %p664_p13 = pnand %p663_p12, %p657_p2 }
 0x133   : > { %667 = shalt.err (!%p664_p13)
}
 0x134   : > { %505 = dma.vmem_to_hbm [thread:$0]  (%p1024_p3), %s964_s19, 64, %s962_s3, %s361_s15  }
 0x135 PF: > { %s387_s7 = sand.u32 1, %s706_s9   ;;  %p1025_p7 = scmp.ne.s32.totalorder %s1019_s24, 0 }
 0x136   : > { %p1026_p10 = scmp.ge.s32.totalorder %s726_s14, 2  ;;  %s388_s21 = scalar_lea.sflag [#allocation4], %s387_s7 }
 0x138   : > { %p515_p9 = pnand %p1026_p10, %p1025_p7 }
 0x13a   : > { %701 = dma.done.wait (!%p515_p9), %s388_s21, 64  }
 0x13b   : > { %703 = vsyncadd (!%p515_p9), %s388_s21, 4294967232  ;;  %s21_s14 = sadd.s32 1, %s726_s14   ;;  %s1027_s9 = smov %s710_s10 }
 0x13c   : > { %p18_p11 = scmp.ge.s32.totalorder %s21_s14, 4   ;;  %s1028_s10 = smov %s714_s11 }
 0x13d   : > { %s1029_s11 = smov %s804_s23  ;;  %s1030_s12 = smov %s722_s13 }
 0x13e   : > { %s1031_s13 = smov %s1033_s17  ;;  %20 = sbr.rel (!%p18_p11) target bundleno = 8 (0x8), region = 86 }
 0x145   :  { %393 = vsyncpa [#allocation3], 1 }
 0x146   :  { %395 = vsyncpa [#allocation3 + $0x1], 1 }
 0x147   :  { %396 = vsyncpa [#allocation6], 1 }
 0x148   :  { %398 = vsyncpa [#allocation6 + $0x1], 1 }
 0x149   :  { %399 = vsyncpa [#allocation4], 1 }
 0x14a   :  { %401 = vsyncpa [#allocation4 + $0x1], 1 }

</bundles_post_ra>
